<compile_context>
chip_gen: v7x
topology: tpu7x:2x2x1
jax: 0.10.0
libtpu: 0.0.40
codegen_flags: <defaults>
</compile_context>

<pallas_src>
import jax
import jax.numpy as jnp
from jax import lax
from jax.experimental import pallas as pl
from jax.experimental.pallas import tpu as pltpu


def _round_up(x: int, m: int) -> int:
    return pl.cdiv(x, m) * m


def logreg_kernel(x_ref, w_ref, b_ref, o_ref):
    # x_ref: (TB, F) VMEM, w_ref: (1, F) VMEM, b_ref: (1,) SMEM, o_ref: (1, TB) VMEM
    # Lane-dense matvec: (1, F) x (TB, F)^T -> (1, TB).
    logits = lax.dot_general(
        w_ref[...], x_ref[...],
        dimension_numbers=(((1,), (1,)), ((), ())),
        preferred_element_type=jnp.float32,
    ) + b_ref[0]
    # sigmoid(z) = 1 / (1 + exp(-z)); approx reciprocal runs on the (idle) EUP slot.
    o_ref[...] = pl.reciprocal(1.0 + jnp.exp(-logits), approx=True)


def logistic_regression(x, weight, bias, *, block_rows=512):
    """y = sigmoid(x @ weight.T + bias); x:(B,F), weight:(1,F), bias:(1,) -> (B,1)."""
    B, F = x.shape
    assert weight.shape == (1, F) and bias.shape == (1,)

    # Row tile: multiple of 128 (lane-dense output block; also covers the f32
    # sublane multiple-of-8 rule for the x block), capped so one (TB, F) f32
    # buffer stays <= ~4 MiB (double-buffered it still fits v7x's smaller VMEM),
    # and no larger than the (padded) batch.
    cap = max(128, ((4 * 1024 * 1024) // (F * 4)) // 128 * 128)
    TB = min(_round_up(block_rows, 128), cap, _round_up(B, 128))
    # TODO(synk): if F ever grows so large that a (128, F) f32 block no longer
    # fits VMEM, add a K grid axis over F with an f32 accumulator scratch.

    Bp = _round_up(B, TB)
    if Bp != B:
        x = jnp.pad(x, ((0, Bp - B), (0, 0)))
    num_tiles = Bp // TB

    # Double-buffered x tile + output row + weights, plus generous slack.
    vmem_limit = max(16 * 1024 * 1024, 2 * (TB * F * 4 + TB * 4) + (4 << 20))

    out = pl.pallas_call(
        logreg_kernel,
        out_shape=jax.ShapeDtypeStruct((1, Bp), jnp.float32),
        grid_spec=pltpu.PrefetchScalarGridSpec(
            num_scalar_prefetch=0,
            grid=(num_tiles,),
            in_specs=[
                pl.BlockSpec((TB, F), lambda i: (i, 0)),             # x row tile
                pl.BlockSpec((1, F), lambda i: (0, 0)),              # weight (resident)
                pl.BlockSpec(memory_space=pltpu.MemorySpace.SMEM),   # bias scalar
            ],
            out_specs=pl.BlockSpec((1, TB), lambda i: (0, i)),       # lane-dense row
        ),
        compiler_params=pltpu.CompilerParams(
            dimension_semantics=("parallel",),
            vmem_limit_bytes=int(vmem_limit),
        ),
    )(x, weight, bias)
    return out[0, :B].reshape(B, 1)


if __name__ == "__main__":
    key = jax.random.PRNGKey(0)
    kx, kw, kb = jax.random.split(key, 3)

    batch = 8
    n_features = 32

    # nn.Linear-style init U(-1/sqrt(F), 1/sqrt(F)); weight kept in PyTorch (1, F) layout.
    bound = 1.0 / jnp.sqrt(jnp.float32(n_features))
    weight = jax.random.uniform(kw, (1, n_features), jnp.float32, -bound, bound)
    bias = jax.random.uniform(kb, (1,), jnp.float32, -bound, bound)
    x = jax.random.normal(kx, (batch, n_features), jnp.float32)

    y = logistic_regression(x, weight, bias)
    jax.block_until_ready(y)

    # Reference in plain JAX; tolerance covers the EUP approximate reciprocal.
    y_ref = jax.nn.sigmoid(x @ weight.T + bias)
    assert y.shape == (batch, 1)
    assert jnp.allclose(y, y_ref, atol=2e-3, rtol=2e-3), float(jnp.max(jnp.abs(y - y_ref)))

    print("KERNEL_OK")
</pallas_src>

<mosaic_0001>
module attributes {stable_mosaic.version = 11 : i64} {
  func.func @logreg_kernel(%arg0: i32, %arg1: memref<128x32xf32, #tpu.memory_space<vmem>>, %arg2: memref<1x32xf32, #tpu.memory_space<vmem>>, %arg3: memref<1xf32, #tpu.memory_space<smem>>, %arg4: memref<1x128xf32, #tpu.memory_space<vmem>>) attributes {dimension_semantics = [#tpu.dimension_semantics<parallel>], iteration_bounds = array<i64: 1>, scalar_prefetch = 0 : i64, scratch_operands = 0 : i64, tpu.core_type = #tpu.core_type<tc>, window_params = [{transform_indices = @transform_0, window_bounds = array<i64: 128, 32>}, {pipeline_mode = #tpu.pipeline_mode<synchronous>, transform_indices = @transform_1, window_bounds = array<i64: 1, 32>}, {transform_indices = @transform_2, window_bounds = array<i64: 1>}, {transform_indices = @transform_3, window_bounds = array<i64: 1, 128>}]} {
    %c0 = arith.constant 0 : index
    %c0_0 = arith.constant 0 : index
    %0 = vector.load %arg2[%c0, %c0_0] : memref<1x32xf32, #tpu.memory_space<vmem>>, vector<1x32xf32>
    %c0_1 = arith.constant 0 : index
    %c0_2 = arith.constant 0 : index
    %1 = vector.load %arg1[%c0_1, %c0_2] : memref<128x32xf32, #tpu.memory_space<vmem>>, vector<128x32xf32>
    %cst = arith.constant dense<0.000000e+00> : vector<1x128xf32>
    %2 = tpu.matmul %0, %1, %cst {dimension_numbers = #tpu.dot_dimension_numbers<[1], [1], [0], [0], [0, 0, 1, 0], [], []>} : vector<1x32xf32>, vector<128x32xf32>, vector<1x128xf32> -> vector<1x128xf32>
    %c0_3 = arith.constant 0 : index
    %3 = memref.load %arg3[%c0_3] : memref<1xf32, #tpu.memory_space<smem>>
    %4 = vector.broadcast %3 : f32 to vector<1x128xf32>
    %5 = arith.addf %2, %4 : vector<1x128xf32>
    %cst_4 = arith.constant 0.000000e+00 : f32
    %6 = vector.broadcast %cst_4 : f32 to vector<1x128xf32>
    %7 = arith.subf %6, %5 : vector<1x128xf32>
    %8 = math.exp %7 : vector<1x128xf32>
    %cst_5 = arith.constant 1.000000e+00 : f32
    %9 = vector.broadcast %cst_5 : f32 to vector<1x128xf32>
    %10 = arith.addf %9, %8 : vector<1x128xf32>
    %11 = tpu.reciprocal %10 {approx = true} : vector<1x128xf32> -> vector<1x128xf32>
    %c0_6 = arith.constant 0 : index
    %c0_7 = arith.constant 0 : index
    %12 = vector.load %arg4[%c0_6, %c0_7] : memref<1x128xf32, #tpu.memory_space<vmem>>, vector<1x128xf32>
    tpu.vector_store %arg4[%c0_6, %c0_7], %11 {strides = array<i32>} : memref<1x128xf32, #tpu.memory_space<vmem>>, vector<1x128xf32>,
    return
  }
  func.func @transform_0(%arg0: i32) -> (i32, i32) {
    %c0_i32 = arith.constant 0 : i32
    %c0_i32_0 = arith.constant 0 : i32
    return %arg0, %c0_i32 : i32, i32
  }
  func.func @transform_1(%arg0: i32) -> (i32, i32) {
    %c0_i32 = arith.constant 0 : i32
    %c0_i32_0 = arith.constant 0 : i32
    %c0_i32_1 = arith.constant 0 : i32
    return %c0_i32, %c0_i32_0 : i32, i32
  }
  func.func @transform_2(%arg0: i32) -> i32 {
    %c0_i32 = arith.constant 0 : i32
    %c0_i32_0 = arith.constant 0 : i32
    return %c0_i32 : i32
  }
  func.func @transform_3(%arg0: i32) -> (i32, i32) {
    %c0_i32 = arith.constant 0 : i32
    %c0_i32_0 = arith.constant 0 : i32
    return %c0_i32, %arg0 : i32, i32
  }
}

</mosaic_0001>

<bundles_post_ra>
// kernel: tpu_custom_call.1
= control target key start
LH: loop header
LB: loop body
LE: loop exit
PB: predicated region body
PF: predicated region fallthrough
CT: control target
= control target key end

     0   :  { %vm35_vm0 = vcmask 261120   ;;  %v310_v2 = vmov 0.0|0.0   ;;  %vm311_vm2 = vmmov 0   ;;  %v312_v5 = vmov 0.0   ;;  %s423_s0 = inlined_call_operand.vmem [shape: f32[128,32], index: 0, kind: input, shape index: {}]   ;;  %s424_s1 = inlined_call_operand.vmem [shape: f32[1,32], index: 1, kind: input, shape index: {}]   ;;  %s425_s2 = inlined_call_operand.<no memory space> [shape: f32[1], index: 2, kind: input, shape index: {}]   ;;  %s426_s3 = inlined_call_operand.hbm [shape: f32[1,128], index: 3, kind: output, shape index: {}]  }
   0x1   :  { %v17_v0 = vld [vmem:[%s423_s0] sm:$0xff]  ;;  %v18_v1 = vld [vmem:[%s423_s0 + $0x8] sm:$0xff]  ;;  %246 = vmatprep.subr.bf16.mxu0 %v310_v2  ;;  %vm342_vm1 = vmpackc.low %vm35_vm0, %vm35_vm0  ;;  %243 = vmatprep.mubr.msk.f32.mxu0 %vm311_vm2, %v312_v5 }
   0x2   :  { %v247_v3 = vpack.c.bf16 %v18_v1, %v17_v0  ;;  %v19_v6 = vld [vmem:[%s423_s0 + $0x10] sm:$0xff]  ;;  %v20_v7 = vld [vmem:[%s423_s0 + $0x18] sm:$0xff] }
   0x4   :  { %249 = vmatpush3.bf16.xpose.msk.msra.mxu0 %vm342_vm1, %v247_v3 }
   0x5   :  { %250 = vmatprep.subr.bf16.mxu0 %v310_v2 }
   0x6   :  { %9 = vsyncpa [#allocation4], 0  ;;  %v251_v8 = vpack.c.bf16 %v20_v7, %v19_v6  ;;  %v21_v9 = vld [vmem:[%s423_s0 + $0x20] sm:$0xff]  ;;  %v22_v10 = vld [vmem:[%s423_s0 + $0x28] sm:$0xff]  ;;  %v34_v28 = vstv %s425_s2 }
   0x7   :  { %v255_v11 = vpack.c.bf16 %v22_v10, %v21_v9  ;;  %v23_v12 = vld [vmem:[%s423_s0 + $0x30] sm:$0xff]  ;;  %v24_v13 = vld [vmem:[%s423_s0 + $0x38] sm:$0xff]  ;;  %v25_v15 = vld [vmem:[%s423_s0 + $0x40] sm:$0xff] }
   0x8   :  { %v259_v14 = vpack.c.bf16 %v24_v13, %v23_v12  ;;  %v26_v16 = vld [vmem:[%s423_s0 + $0x48] sm:$0xff]  ;;  %v27_v18 = vld [vmem:[%s423_s0 + $0x50] sm:$0xff]  ;;  %v28_v19 = vld [vmem:[%s423_s0 + $0x58] sm:$0xff] }
   0x9   :  { %v263_v17 = vpack.c.bf16 %v26_v16, %v25_v15  ;;  %v267_v20 = vpack.c.bf16 %v28_v19, %v27_v18  ;;  %v29_v21 = vld [vmem:[%s423_s0 + $0x60] sm:$0xff]  ;;  %v30_v22 = vld [vmem:[%s423_s0 + $0x68] sm:$0xff]  ;;  %v31_v24 = vld [vmem:[%s423_s0 + $0x70] sm:$0xff] }
   0xa   :  { %v271_v23 = vpack.c.bf16 %v30_v22, %v29_v21  ;;  %v32_v25 = vld [vmem:[%s423_s0 + $0x78] sm:$0xff]  ;;  %v16_v27 = vld [vmem:[%s424_s1] sm:$0x1]  ;;  %s313_s0 = smov [#allocation3]  }
   0xb   :  { %v275_v26 = vpack.c.bf16 %v32_v25, %v31_v24  ;;  %s169_s21 = sshll.u32 %s313_s0, 4  ;;  %s170_s21 = int_to_ptr.vmem [resolvable:$true] %s169_s21 }
   0xc   :  { %253 = vmatpush3.bf16.xpose.msk.msra.mxu0 %vm342_vm1, %v251_v8  ;;  %s286_s1 = scalar_lea.vmem %s170_s21, 16  ;;  %s290_s22 = scalar_lea.vmem %s170_s21, 32 }
   0xd   :  { %254 = vmatprep.subr.bf16.mxu0 %v310_v2  ;;  %p287_p0 = scmp.ne.s32.totalorder %s170_s21, %s286_s1  ;;  %p291_p1 = scmp.lt.s32.totalorder %s170_s21, %s170_s21 }
   0xe   :  { %p292_p2 = scmp.lt.s32.totalorder %s290_s22, %s286_s1 }
  0x10   :  { %p293_p3 = por %p292_p2, %p291_p1 }
  0x12   :  { %p294_p4 = pnand %p293_p3, %p287_p0 }
  0x14   :  { %257 = vmatpush3.bf16.xpose.msk.msra.mxu0 %vm342_vm1, %v255_v11 }
  0x15   :  { %258 = vmatprep.subr.bf16.mxu0 %v310_v2 }
  0x1c   :  { %261 = vmatpush3.bf16.xpose.msk.msra.mxu0 %vm342_vm1, %v259_v14 }
  0x1d   :  { %262 = vmatprep.subr.bf16.mxu0 %v310_v2 }
  0x24   :  { %265 = vmatpush3.bf16.xpose.msk.msra.mxu0 %vm342_vm1, %v263_v17 }
  0x25   :  { %266 = vmatprep.subr.bf16.mxu0 %v310_v2 }
  0x2c   :  { %269 = vmatpush3.bf16.xpose.msk.msra.mxu0 %vm342_vm1, %v267_v20 }
  0x2d   :  { %270 = vmatprep.subr.bf16.mxu0 %v310_v2 }
  0x34   :  { %273 = vmatpush3.bf16.xpose.msk.msra.mxu0 %vm342_vm1, %v271_v23 }
  0x35   :  { %274 = vmatprep.subr.bf16.mxu0 %v310_v2 }
  0x3c   :  { %277 = vmatpush3.bf16.xpose.msk.msra.mxu0 %vm342_vm1, %v275_v26 }
  0x43   :  { %244 = vmatmul.mubr.msk.f32.vlgmr.msra.gmra.mrb[0].mxu0 %vm35_vm0, %v16_v27 }
 0x116   :  { %v153_v29 = vpop.f32.mrb[0].mxu0 }
 0x117   :  { %v154_v30 = vadd.f32 %v153_v29, %v34_v28  ;;  %v245_v31 = vpop.f32.mrb[1].mxu0 }
 0x119   :  { %v157_v32 = vsub.f32 0.0, %v154_v30 }
 0x11b   :  { %v158_v33 = vmul.f32 1.442695, %v157_v32 }
 0x11d   :  { %282 = vpow2.f32 %v158_v33 }
 0x127   :  { %v283_v34 = vpop.eup %282 }
 0x128   :  { %v160_v35 = vadd.f32 1.0, %v283_v34 }
 0x12a   :  { %284 = vrcp.f32 %v160_v35 }
 0x134   :  { %v285_v36 = vpop.eup %284 }
 0x135   :  { %162 = vst [vmem:[#allocation3] sm:$0x1] %v285_v36 }
 0x136   :  { %297 = shalt.err (!%p294_p4)
}
 0x137   :  { %s298_s24 = scalar_lea.hbm %s426_s3, 16 }
 0x138   :  { %p299_p5 = scmp.ne.s32.totalorder %s426_s3, %s298_s24  ;;  %p302_p6 = scmp.lt.u32.totalorder %s298_s24, %s426_s3 }
 0x13a   :  { %p304_p7 = pnand %p302_p6, %p299_p5 }
 0x13c   :  { %307 = shalt.err (!%p304_p7)
}
 0x13d   :  { %172 = dma.vmem_to_hbm [thread:$0]  %s170_s21, 16, %s426_s3, [#allocation4]  }
 0x13e   :  { %308 = dma.done.wait [#allocation4], 16  }
 0x13f   :  { %309 = vsyncadd [#allocation4], 4294967280 }
 0x140   :  { %176 = vsyncpa [#allocation4], 1 }

</bundles_post_ra>
